<compile_context>
chip_gen: v7x
topology: tpu7x:2x2x1
jax: 0.10.0
libtpu: 0.0.40
codegen_flags: <defaults>
</compile_context>

<pallas_src>
import jax
import jax.numpy as jnp
from jax.experimental import pallas as pl
from jax.experimental.pallas import tpu as pltpu


# ----------------------------------------------------------------------------
# Fused kernel: one-hot gather + fused obs/cmd GRU recurrence + DQN MLP head.
# ----------------------------------------------------------------------------
def _build_kernel(T_max, R, nb, H, V_pad):
    """Kernel closure over the static problem dimensions."""
    G = 2 * H                        # stacked hidden width: [obs | cmd]
    d1 = int(2 * H * 0.75)
    d2 = int(2 * H * 0.5)
    d3 = int(2 * H * 0.25)

    def kernel(ids_ref, mat_ref, head_ref, out_ref):
        # ---- parameter slabs (static slices, no extra DMAs) ----
        proj = mat_ref[pl.ds(0, V_pad), :]      # (V_pad, 6H) folded emb->gate tables
        w_blk = mat_ref[pl.ds(V_pad, G), :]     # (2H, 6H)    block-diag W_hh (obs ⊕ cmd)
        head = head_ref[...]                    # DQN weights + all biases + b_hn

        # ---- token gather for BOTH encoders: one one-hot MXU matmul ----
        ids = ids_ref[...]                                                   # (T_max*R, 1)
        iota = jax.lax.broadcasted_iota(jnp.int32, (T_max * R, V_pad), 1)
        ids_b = jnp.broadcast_to(ids, (T_max * R, V_pad))
        onehot = jnp.where(iota == ids_b, 1.0, 0.0).astype(jnp.float32)
        xp_all = jnp.dot(onehot, proj, preferred_element_type=jnp.float32)   # (T_max*R, 6H)

        bhn = jnp.broadcast_to(head[G + 4:G + 5, :G], (R, G))                # hoisted b_hn

        # ---- fused obs+cmd GRU recurrence: ONE matmul per step, fully unrolled ----
        h = jnp.zeros((R, G), jnp.float32)
        for t in range(T_max):
            xp = xp_all[t * R:(t + 1) * R]                                   # (R, 6H) aligned
            if t == 0:
                # h == 0: skip the hidden matmul entirely on the first step.
                r = jax.nn.sigmoid(xp[:, :G])
                z = jax.nn.sigmoid(xp[:, G:2 * G])
                n = jnp.tanh(xp[:, 2 * G:] + r * bhn)
                h = (1.0 - z) * n
            else:
                hp = jnp.dot(h, w_blk, preferred_element_type=jnp.float32)   # (R, 6H)
                r = jax.nn.sigmoid(xp[:, :G] + hp[:, :G])
                z = jax.nn.sigmoid(xp[:, G:2 * G] + hp[:, G:2 * G])
                n = jnp.tanh(xp[:, 2 * G:] + r * (hp[:, 2 * G:] + bhn))
                h = (1.0 - z) * n + z * h

        h_obs = h[0:1, :H]                # (1, H)   final obs-encoder hidden
        h_cmd = h[1:1 + nb, H:G]          # (nb, H)  final cmd-encoder hiddens

        # ---- DQN head; first layer split into obs/cmd halves (no lane concat);
        #      the (1, d1) obs term broadcasts over nb commands for free. ----
        w1 = head[0:G, 0:d1]
        w2 = head[0:d1, d1:d1 + d2]
        w3 = head[0:d2, d1 + d2:d1 + d2 + d3]
        w4 = head[0:d3, d1 + d2 + d3:d1 + d2 + d3 + 1]
        b1 = head[G:G + 1, 0:d1]
        b2 = head[G + 1:G + 2, 0:d2]
        b3 = head[G + 2:G + 3, 0:d3]
        b4 = head[G + 3:G + 4, 0:1]

        h1 = jnp.maximum(
            jnp.dot(h_cmd, w1[H:G], preferred_element_type=jnp.float32)
            + jnp.dot(h_obs, w1[:H], preferred_element_type=jnp.float32)
            + b1, 0.0)
        h2 = jnp.maximum(jnp.dot(h1, w2, preferred_element_type=jnp.float32) + b2, 0.0)
        h3 = jnp.maximum(jnp.dot(h2, w3, preferred_element_type=jnp.float32) + b3, 0.0)
        out_ref[...] = jnp.dot(h3, w4, preferred_element_type=jnp.float32) + b4

    return kernel


# ----------------------------------------------------------------------------
# Parameter construction (deterministic, synthetic) + one-time transform into
# the two kernel slabs.  Also returns the raw (unfolded) params for a pure-JAX
# reference check.
# ----------------------------------------------------------------------------
def make_params(key, vocab, hidden):
    H = hidden
    P = jax.lax.Precision.HIGHEST
    ks = jax.random.split(key, 8)
    emb = jax.random.normal(ks[0], (vocab, H), jnp.float32) * 0.1

    def gru_raw(k):
        k1, k2, k3, k4 = jax.random.split(k, 4)
        # y = x @ W layout (torch W^T), gate columns [r | z | n].
        wih = jax.random.normal(k1, (H, 3 * H), jnp.float32) * 0.1
        whh = jax.random.normal(k2, (H, 3 * H), jnp.float32) * 0.1
        bih = jax.random.normal(k3, (1, 3 * H), jnp.float32) * 0.1
        bhh = jax.random.normal(k4, (1, 3 * H), jnp.float32) * 0.1
        return wih, whh, bih, bhh

    gru_o = gru_raw(ks[1])
    gru_c = gru_raw(ks[2])

    def fold(gru):
        wih, _, bih, bhh = gru
        # r/z biases pre-summed (b_ih+b_hh); n input-bias folded in; b_hn stays separate.
        bx = jnp.concatenate([bih[:, :2 * H] + bhh[:, :2 * H], bih[:, 2 * H:]], axis=1)
        return jnp.dot(emb, wih, precision=P) + bx            # (vocab, 3H)

    proj_o, proj_c = fold(gru_o), fold(gru_c)

    def interleave(a, b):   # (rows,3H)x2 -> (rows,6H) gate-major [r_o r_c | z_o z_c | n_o n_c]
        return jnp.concatenate(
            [jnp.concatenate([a[:, g * H:(g + 1) * H], b[:, g * H:(g + 1) * H]], axis=1)
             for g in range(3)], axis=1)

    proj_tab = interleave(proj_o, proj_c)                     # (vocab, 6H)
    V_pad = ((vocab + 1 + 127) // 128) * 128
    pad_rows = jnp.zeros((V_pad - vocab, 6 * H), jnp.float32)
    # Last row = PAD token: z pre-activation +40 -> z == 1.0 exactly -> h carries through.
    pad_rows = pad_rows.at[-1, 2 * H:4 * H].set(40.0)
    proj_tab = jnp.concatenate([proj_tab, pad_rows], axis=0)  # (V_pad, 6H)

    def blockdiag(wo, wc):  # (H,3H)x2 -> (2H,6H): per gate block, obs ⊕ cmd (no cross terms)
        zz = jnp.zeros((H, H), jnp.float32)
        return jnp.concatenate(
            [jnp.concatenate(
                [jnp.concatenate([wo[:, g * H:(g + 1) * H], zz], axis=1),
                 jnp.concatenate([zz, wc[:, g * H:(g + 1) * H]], axis=1)], axis=0)
             for g in range(3)], axis=1)

    mat_slab = jnp.concatenate([proj_tab, blockdiag(gru_o[1], gru_c[1])], axis=0)

    bhn_row = jnp.concatenate([gru_o[3][:, 2 * H:], gru_c[3][:, 2 * H:]], axis=1)  # (1, 2H)

    # DQN: Linear(2H,0.75*2H) -> ... -> Linear(0.25*2H, 1); packed with biases into one slab.
    d0 = 2 * H
    dims = [d0, int(d0 * 0.75), int(d0 * 0.5), int(d0 * 0.25), 1]
    dqn = []
    for i in range(4):
        kw, kb = jax.random.split(ks[3 + i], 2)
        dqn.append((jax.random.normal(kw, (dims[i], dims[i + 1]), jnp.float32) * 0.1,
                    jax.random.normal(kb, (1, dims[i + 1]), jnp.float32) * 0.1))
    d1, d2, d3 = dims[1], dims[2], dims[3]
    n_cols = ((max(d1 + d2 + d3 + 1, d0) + 127) // 128) * 128
    head = jnp.zeros((d0 + 8, n_cols), jnp.float32)
    head = head.at[0:d0, 0:d1].set(dqn[0][0])                                   # w1 (obs|cmd rows)
    head = head.at[0:d1, d1:d1 + d2].set(dqn[1][0])                             # w2
    head = head.at[0:d2, d1 + d2:d1 + d2 + d3].set(dqn[2][0])                   # w3
    head = head.at[0:d3, d1 + d2 + d3:d1 + d2 + d3 + 1].set(dqn[3][0])          # w4
    head = head.at[d0:d0 + 1, 0:d1].set(dqn[0][1])                              # b1
    head = head.at[d0 + 1:d0 + 2, 0:d2].set(dqn[1][1])                          # b2
    head = head.at[d0 + 2:d0 + 3, 0:d3].set(dqn[2][1])                          # b3
    head = head.at[d0 + 3:d0 + 4, 0:1].set(dqn[3][1])                           # b4
    head = head.at[d0 + 4:d0 + 5, 0:d0].set(bhn_row)                            # b_hn (obs|cmd)

    raw = (emb, gru_o, gru_c, tuple(dqn))
    return (mat_slab, head), raw


# ----------------------------------------------------------------------------
# Forward pass (mirrors NaiveNet.forward with last_cmds is None)
# ----------------------------------------------------------------------------
def naive_net_forward(obs, commands, params):
    """obs: (T_obs, 1) int32 tokens, commands: (T_cmd, nb) int32 -> (1, 1, nb) f32."""
    mat_slab, head_slab = params
    H = mat_slab.shape[1] // 6
    V_pad = mat_slab.shape[0] - 2 * H
    PAD = V_pad - 1

    T_obs, B = obs.shape
    assert B == 1, "torch.cat in the reference forward only supports batch == 1"
    T_cmd, nb = commands.shape
    T_max = max(T_obs, T_cmd)
    R = ((1 + nb + 7) // 8) * 8          # stacked rows, padded to a sublane multiple

    # Per-step token ids: col 0 = obs token, cols 1..nb = cmd tokens, rest PAD.
    # The shorter sequence is left-padded with PAD (exact no-op steps in-kernel).
    ids = jnp.full((T_max, R), PAD, dtype=jnp.int32)
    ids = ids.at[T_max - T_obs:, 0].set(obs[:, 0].astype(jnp.int32))
    ids = ids.at[T_max - T_cmd:, 1:1 + nb].set(commands.astype(jnp.int32))
    ids = ids.reshape(T_max * R, 1)

    kernel = _build_kernel(T_max, R, nb, H, V_pad)
    vmem = pl.BlockSpec(memory_space=pltpu.MemorySpace.VMEM)
    scores = pl.pallas_call(
        kernel,
        out_shape=jax.ShapeDtypeStruct((nb, 1), jnp.float32),
        in_specs=[vmem, vmem, vmem],
        out_specs=vmem,
        compiler_params=pltpu.CompilerParams(vmem_limit_bytes=4 * 1024 * 1024),
    )(ids, mat_slab, head_slab)

    # torch result after squeeze(-1): (1, batch=1, nb_cmds)
    return scores[:, 0].reshape(1, 1, nb)

# TODO(synk): the stateful `use_last_action` path (prepending last_cmds[:, last_action]
# to obs) and set_hidden/get_hidden bookkeeping are module state across calls and are
# not implemented; on the first call last_cmds is None so semantics match.


# ----------------------------------------------------------------------------
# Pure-JAX reference (unfolded params, f32-highest matmuls) for validation.
# ----------------------------------------------------------------------------
def reference_forward(obs, commands, raw):
    emb, gru_o, gru_c, dqn = raw
    H = emb.shape[1]
    P = jax.lax.Precision.HIGHEST

    def gru_last(x, p):              # x: (T, B, H) -> (B, H) final hidden
        wih, whh, bih, bhh = p
        def step(h, xt):
            gi = jnp.dot(xt, wih, precision=P) + bih
            gh = jnp.dot(h, whh, precision=P) + bhh
            r = jax.nn.sigmoid(gi[:, :H] + gh[:, :H])
            z = jax.nn.sigmoid(gi[:, H:2 * H] + gh[:, H:2 * H])
            n = jnp.tanh(gi[:, 2 * H:] + r * gh[:, 2 * H:])
            return (1.0 - z) * n + z * h, None
        h0 = jnp.zeros((x.shape[1], H), jnp.float32)
        hT, _ = jax.lax.scan(step, h0, x)
        return hT

    h_obs = gru_last(emb[obs[:, 0]][:, None, :], gru_o)      # (1, H)
    h_cmd = gru_last(emb[commands], gru_c)                   # (nb, H)
    nb = commands.shape[1]
    x = jnp.concatenate([jnp.broadcast_to(h_obs, (nb, H)), h_cmd], axis=1)
    (w1, b1), (w2, b2), (w3, b3), (w4, b4) = dqn
    x = jnp.maximum(jnp.dot(x, w1, precision=P) + b1, 0.0)
    x = jnp.maximum(jnp.dot(x, w2, precision=P) + b2, 0.0)
    x = jnp.maximum(jnp.dot(x, w3, precision=P) + b3, 0.0)
    x = jnp.dot(x, w4, precision=P) + b4                     # (nb, 1)
    return x[:, 0].reshape(1, 1, nb)


if __name__ == "__main__":
    VOCAB = 50
    HIDDEN = 32
    T_OBS = 8
    T_CMD = 6
    NB_CMDS = 4
    BATCH = 1  # torch.cat in the reference forward requires batch == 1

    key = jax.random.PRNGKey(0)
    kp, ko, kc = jax.random.split(key, 3)
    params, raw = make_params(kp, VOCAB, HIDDEN)

    obs = jax.random.randint(ko, (T_OBS, BATCH), 0, VOCAB, dtype=jnp.int32)
    commands = jax.random.randint(kc, (T_CMD, NB_CMDS), 0, VOCAB, dtype=jnp.int32)

    fwd = jax.jit(naive_net_forward)
    scores = fwd(obs, commands, params)
    jax.block_until_ready(scores)
    assert scores.shape == (1, BATCH, NB_CMDS)
    assert bool(jnp.all(jnp.isfinite(scores)))

    ref = reference_forward(obs, commands, raw)
    assert jnp.allclose(scores, ref, rtol=2e-2, atol=2e-2)

    print("KERNEL_OK")
</pallas_src>

<mosaic_0001>
module attributes {stable_mosaic.version = 11 : i64} {
  func.func @kernel(%arg0: memref<64x1xi32, #tpu.memory_space<vmem>>, %arg1: memref<192x192xf32, #tpu.memory_space<vmem>>, %arg2: memref<72x128xf32, #tpu.memory_space<vmem>>, %arg3: memref<4x1xf32, #tpu.memory_space<vmem>>) attributes {dimension_semantics = [], scalar_prefetch = 0 : i64, scratch_operands = 0 : i64, tpu.core_type = #tpu.core_type<tc>} {
    %c0 = arith.constant 0 : index
    %c0_0 = arith.constant 0 : index
    %0 = vector.load %arg1[%c0, %c0_0] : memref<192x192xf32, #tpu.memory_space<vmem>>, vector<128x192xf32>
    %c128 = arith.constant 128 : index
    %c0_1 = arith.constant 0 : index
    %1 = vector.load %arg1[%c128, %c0_1] : memref<192x192xf32, #tpu.memory_space<vmem>>, vector<64x192xf32>
    %c0_2 = arith.constant 0 : index
    %c0_3 = arith.constant 0 : index
    %2 = vector.load %arg2[%c0_2, %c0_3] : memref<72x128xf32, #tpu.memory_space<vmem>>, vector<72x128xf32>
    %c0_4 = arith.constant 0 : index
    %c0_5 = arith.constant 0 : index
    %3 = vector.load %arg0[%c0_4, %c0_5] : memref<64x1xi32, #tpu.memory_space<vmem>>, vector<64x1xi32>
    %4 = tpu.iota {dimensions = array<i32: 1>} : vector<64x128xi32>
    %5 = vector.shape_cast %3 : vector<64x1xi32> to vector<64x1xi32>
    %6 = vector.broadcast %5 : vector<64x1xi32> to vector<64x128xi32>
    %7 = arith.cmpi eq, %4, %6 : vector<64x128xi32>
    %cst = arith.constant 1.000000e+00 : f32
    %cst_6 = arith.constant 0.000000e+00 : f32
    %8 = vector.broadcast %cst : f32 to vector<64x128xf32>
    %9 = vector.broadcast %cst_6 : f32 to vector<64x128xf32>
    %10 = arith.select %7, %8, %9 : vector<64x128xi1>, vector<64x128xf32>
    %cst_7 = arith.constant dense<0.000000e+00> : vector<64x192xf32>
    %11 = tpu.matmul %10, %0, %cst_7 {dimension_numbers = #tpu.dot_dimension_numbers<[1], [0], [0], [1], [0, 0, 1, 1], [], []>} : vector<64x128xf32>, vector<128x192xf32>, vector<64x192xf32> -> vector<64x192xf32>
    %12 = vector.extract_strided_slice %2 {offsets = [68, 0], sizes = [1, 64], strides = [1, 1]} : vector<72x128xf32> to vector<1x64xf32>
    %13 = vector.shape_cast %12 : vector<1x64xf32> to vector<1x64xf32>
    %14 = vector.broadcast %13 : vector<1x64xf32> to vector<8x64xf32>
    %15 = vector.extract_strided_slice %11 {offsets = [0, 0], sizes = [8, 192], strides = [1, 1]} : vector<64x192xf32> to vector<8x192xf32>
    %16 = vector.extract_strided_slice %15 {offsets = [0, 0], sizes = [8, 64], strides = [1, 1]} : vector<8x192xf32> to vector<8x64xf32>
    %17 = arith.negf %16 : vector<8x64xf32>
    %18 = math.exp %17 : vector<8x64xf32>
    %cst_8 = arith.constant 1.000000e+00 : f32
    %19 = vector.broadcast %cst_8 : f32 to vector<8x64xf32>
    %20 = arith.addf %19, %18 : vector<8x64xf32>
    %21 = arith.divf %19, %20 : vector<8x64xf32>
    %22 = vector.extract_strided_slice %15 {offsets = [0, 64], sizes = [8, 64], strides = [1, 1]} : vector<8x192xf32> to vector<8x64xf32>
    %23 = arith.negf %22 : vector<8x64xf32>
    %24 = math.exp %23 : vector<8x64xf32>
    %cst_9 = arith.constant 1.000000e+00 : f32
    %25 = vector.broadcast %cst_9 : f32 to vector<8x64xf32>
    %26 = arith.addf %25, %24 : vector<8x64xf32>
    %27 = arith.divf %25, %26 : vector<8x64xf32>
    %28 = vector.extract_strided_slice %15 {offsets = [0, 128], sizes = [8, 64], strides = [1, 1]} : vector<8x192xf32> to vector<8x64xf32>
    %29 = arith.mulf %21, %14 : vector<8x64xf32>
    %30 = arith.addf %28, %29 : vector<8x64xf32>
    %31 = math.tanh %30 : vector<8x64xf32>
    %cst_10 = arith.constant 1.000000e+00 : f32
    %32 = vector.broadcast %cst_10 : f32 to vector<8x64xf32>
    %33 = arith.subf %32, %27 : vector<8x64xf32>
    %34 = arith.mulf %33, %31 : vector<8x64xf32>
    %35 = vector.extract_strided_slice %11 {offsets = [8, 0], sizes = [8, 192], strides = [1, 1]} : vector<64x192xf32> to vector<8x192xf32>
    %cst_11 = arith.constant dense<0.000000e+00> : vector<8x192xf32>
    %36 = tpu.matmul %34, %1, %cst_11 {dimension_numbers = #tpu.dot_dimension_numbers<[1], [0], [0], [1], [0, 0, 1, 1], [], []>} : vector<8x64xf32>, vector<64x192xf32>, vector<8x192xf32> -> vector<8x192xf32>
    %37 = vector.extract_strided_slice %35 {offsets = [0, 0], sizes = [8, 64], strides = [1, 1]} : vector<8x192xf32> to vector<8x64xf32>
    %38 = vector.extract_strided_slice %36 {offsets = [0, 0], sizes = [8, 64], strides = [1, 1]} : vector<8x192xf32> to vector<8x64xf32>
    %39 = arith.addf %37, %38 : vector<8x64xf32>
    %40 = arith.negf %39 : vector<8x64xf32>
    %41 = math.exp %40 : vector<8x64xf32>
    %cst_12 = arith.constant 1.000000e+00 : f32
    %42 = vector.broadcast %cst_12 : f32 to vector<8x64xf32>
    %43 = arith.addf %42, %41 : vector<8x64xf32>
    %44 = arith.divf %42, %43 : vector<8x64xf32>
    %45 = vector.extract_strided_slice %35 {offsets = [0, 64], sizes = [8, 64], strides = [1, 1]} : vector<8x192xf32> to vector<8x64xf32>
    %46 = vector.extract_strided_slice %36 {offsets = [0, 64], sizes = [8, 64], strides = [1, 1]} : vector<8x192xf32> to vector<8x64xf32>
    %47 = arith.addf %45, %46 : vector<8x64xf32>
    %48 = arith.negf %47 : vector<8x64xf32>
    %49 = math.exp %48 : vector<8x64xf32>
    %cst_13 = arith.constant 1.000000e+00 : f32
    %50 = vector.broadcast %cst_13 : f32 to vector<8x64xf32>
    %51 = arith.addf %50, %49 : vector<8x64xf32>
    %52 = arith.divf %50, %51 : vector<8x64xf32>
    %53 = vector.extract_strided_slice %35 {offsets = [0, 128], sizes = [8, 64], strides = [1, 1]} : vector<8x192xf32> to vector<8x64xf32>
    %54 = vector.extract_strided_slice %36 {offsets = [0, 128], sizes = [8, 64], strides = [1, 1]} : vector<8x192xf32> to vector<8x64xf32>
    %55 = arith.addf %54, %14 : vector<8x64xf32>
    %56 = arith.mulf %44, %55 : vector<8x64xf32>
    %57 = arith.addf %53, %56 : vector<8x64xf32>
    %58 = math.tanh %57 : vector<8x64xf32>
    %cst_14 = arith.constant 1.000000e+00 : f32
    %59 = vector.broadcast %cst_14 : f32 to vector<8x64xf32>
    %60 = arith.subf %59, %52 : vector<8x64xf32>
    %61 = arith.mulf %60, %58 : vector<8x64xf32>
    %62 = arith.mulf %52, %34 : vector<8x64xf32>
    %63 = arith.addf %61, %62 : vector<8x64xf32>
    %64 = vector.extract_strided_slice %11 {offsets = [16, 0], sizes = [8, 192], strides = [1, 1]} : vector<64x192xf32> to vector<8x192xf32>
    %cst_15 = arith.constant dense<0.000000e+00> : vector<8x192xf32>
    %65 = tpu.matmul %63, %1, %cst_15 {dimension_numbers = #tpu.dot_dimension_numbers<[1], [0], [0], [1], [0, 0, 1, 1], [], []>} : vector<8x64xf32>, vector<64x192xf32>, vector<8x192xf32> -> vector<8x192xf32>
    %66 = vector.extract_strided_slice %64 {offsets = [0, 0], sizes = [8, 64], strides = [1, 1]} : vector<8x192xf32> to vector<8x64xf32>
    %67 = vector.extract_strided_slice %65 {offsets = [0, 0], sizes = [8, 64], strides = [1, 1]} : vector<8x192xf32> to vector<8x64xf32>
    %68 = arith.addf %66, %67 : vector<8x64xf32>
    %69 = arith.negf %68 : vector<8x64xf32>
    %70 = math.exp %69 : vector<8x64xf32>
    %cst_16 = arith.constant 1.000000e+00 : f32
    %71 = vector.broadcast %cst_16 : f32 to vector<8x64xf32>
    %72 = arith.addf %71, %70 : vector<8x64xf32>
    %73 = arith.divf %71, %72 : vector<8x64xf32>
    %74 = vector.extract_strided_slice %64 {offsets = [0, 64], sizes = [8, 64], strides = [1, 1]} : vector<8x192xf32> to vector<8x64xf32>
    %75 = vector.extract_strided_slice %65 {offsets = [0, 64], sizes = [8, 64], strides = [1, 1]} : vector<8x192xf32> to vector<8x64xf32>
    %76 = arith.addf %74, %75 : vector<8x64xf32>
    %77 = arith.negf %76 : vector<8x64xf32>
    %78 = math.exp %77 : vector<8x64xf32>
    %cst_17 = arith.constant 1.000000e+00 : f32
    %79 = vector.broadcast %cst_17 : f32 to vector<8x64xf32>
    %80 = arith.addf %79, %78 : vector<8x64xf32>
    %81 = arith.divf %79, %80 : vector<8x64xf32>
    %82 = vector.extract_strided_slice %64 {offsets = [0, 128], sizes = [8, 64], strides = [1, 1]} : vector<8x192xf32> to vector<8x64xf32>
    %83 = vector.extract_strided_slice %65 {offsets = [0, 128], sizes = [8, 64], strides = [1, 1]} : vector<8x192xf32> to vector<8x64xf32>
    %84 = arith.addf %83, %14 : vector<8x64xf32>
    %85 = arith.mulf %73, %84 : vector<8x64xf32>
    %86 = arith.addf %82, %85 : vector<8x64xf32>
    %87 = math.tanh %86 : vector<8x64xf32>
    %cst_18 = arith.constant 1.000000e+00 : f32
    %88 = vector.broadcast %cst_18 : f32 to vector<8x64xf32>
    %89 = arith.subf %88, %81 : vector<8x64xf32>
    %90 = arith.mulf %89, %87 : vector<8x64xf32>
    %91 = arith.mulf %81, %63 : vector<8x64xf32>
    %92 = arith.addf %90, %91 : vector<8x64xf32>
    %93 = vector.extract_strided_slice %11 {offsets = [24, 0], sizes = [8, 192], strides = [1, 1]} : vector<64x192xf32> to vector<8x192xf32>
    %cst_19 = arith.constant dense<0.000000e+00> : vector<8x192xf32>
    %94 = tpu.matmul %92, %1, %cst_19 {dimension_numbers = #tpu.dot_dimension_numbers<[1], [0], [0], [1], [0, 0, 1, 1], [], []>} : vector<8x64xf32>, vector<64x192xf32>, vector<8x192xf32> -> vector<8x192xf32>
    %95 = vector.extract_strided_slice %93 {offsets = [0, 0], sizes = [8, 64], strides = [1, 1]} : vector<8x192xf32> to vector<8x64xf32>
    %96 = vector.extract_strided_slice %94 {offsets = [0, 0], sizes = [8, 64], strides = [1, 1]} : vector<8x192xf32> to vector<8x64xf32>
    %97 = arith.addf %95, %96 : vector<8x64xf32>
    %98 = arith.negf %97 : vector<8x64xf32>
    %99 = math.exp %98 : vector<8x64xf32>
    %cst_20 = arith.constant 1.000000e+00 : f32
    %100 = vector.broadcast %cst_20 : f32 to vector<8x64xf32>
    %101 = arith.addf %100, %99 : vector<8x64xf32>
    %102 = arith.divf %100, %101 : vector<8x64xf32>
    %103 = vector.extract_strided_slice %93 {offsets = [0, 64], sizes = [8, 64], strides = [1, 1]} : vector<8x192xf32> to vector<8x64xf32>
    %104 = vector.extract_strided_slice %94 {offsets = [0, 64], sizes = [8, 64], strides = [1, 1]} : vector<8x192xf32> to vector<8x64xf32>
    %105 = arith.addf %103, %104 : vector<8x64xf32>
    %106 = arith.negf %105 : vector<8x64xf32>
    %107 = math.exp %106 : vector<8x64xf32>
    %cst_21 = arith.constant 1.000000e+00 : f32
    %108 = vector.broadcast %cst_21 : f32 to vector<8x64xf32>
    %109 = arith.addf %108, %107 : vector<8x64xf32>
    %110 = arith.divf %108, %109 : vector<8x64xf32>
    %111 = vector.extract_strided_slice %93 {offsets = [0, 128], sizes = [8, 64], strides = [1, 1]} : vector<8x192xf32> to vector<8x64xf32>
    %112 = vector.extract_strided_slice %94 {offsets = [0, 128], sizes = [8, 64], strides = [1, 1]} : vector<8x192xf32> to vector<8x64xf32>
    %113 = arith.addf %112, %14 : vector<8x64xf32>
    %114 = arith.mulf %102, %113 : vector<8x64xf32>
    %115 = arith.addf %111, %114 : vector<8x64xf32>
    %116 = math.tanh %115 : vector<8x64xf32>
    %cst_22 = arith.constant 1.000000e+00 : f32
    %117 = vector.broadcast %cst_22 : f32 to vector<8x64xf32>
    %118 = arith.subf %117, %110 : vector<8x64xf32>
    %119 = arith.mulf %118, %116 : vector<8x64xf32>
    %120 = arith.mulf %110, %92 : vector<8x64xf32>
    %121 = arith.addf %119, %120 : vector<8x64xf32>
    %122 = vector.extract_strided_slice %11 {offsets = [32, 0], sizes = [8, 192], strides = [1, 1]} : vector<64x192xf32> to vector<8x192xf32>
    %cst_23 = arith.constant dense<0.000000e+00> : vector<8x192xf32>
    %123 = tpu.matmul %121, %1, %cst_23 {dimension_numbers = #tpu.dot_dimension_numbers<[1], [0], [0], [1], [0, 0, 1, 1], [], []>} : vector<8x64xf32>, vector<64x192xf32>, vector<8x192xf32> -> vector<8x192xf32>
    %124 = vector.extract_strided_slice %122 {offsets = [0, 0], sizes = [8, 64], strides = [1, 1]} : vector<8x192xf32> to vector<8x64xf32>
    %125 = vector.extract_strided_slice %123 {offsets = [0, 0], sizes = [8, 64], strides = [1, 1]} : vector<8x192xf32> to vector<8x64xf32>
    %126 = arith.addf %124, %125 : vector<8x64xf32>
    %127 = arith.negf %126 : vector<8x64xf32>
    %128 = math.exp %127 : vector<8x64xf32>
    %cst_24 = arith.constant 1.000000e+00 : f32
    %129 = vector.broadcast %cst_24 : f32 to vector<8x64xf32>
    %130 = arith.addf %129, %128 : vector<8x64xf32>
    %131 = arith.divf %129, %130 : vector<8x64xf32>
    %132 = vector.extract_strided_slice %122 {offsets = [0, 64], sizes = [8, 64], strides = [1, 1]} : vector<8x192xf32> to vector<8x64xf32>
    %133 = vector.extract_strided_slice %123 {offsets = [0, 64], sizes = [8, 64], strides = [1, 1]} : vector<8x192xf32> to vector<8x64xf32>
    %134 = arith.addf %132, %133 : vector<8x64xf32>
    %135 = arith.negf %134 : vector<8x64xf32>
    %136 = math.exp %135 : vector<8x64xf32>
    %cst_25 = arith.constant 1.000000e+00 : f32
    %137 = vector.broadcast %cst_25 : f32 to vector<8x64xf32>
    %138 = arith.addf %137, %136 : vector<8x64xf32>
    %139 = arith.divf %137, %138 : vector<8x64xf32>
    %140 = vector.extract_strided_slice %122 {offsets = [0, 128], sizes = [8, 64], strides = [1, 1]} : vector<8x192xf32> to vector<8x64xf32>
    %141 = vector.extract_strided_slice %123 {offsets = [0, 128], sizes = [8, 64], strides = [1, 1]} : vector<8x192xf32> to vector<8x64xf32>
    %142 = arith.addf %141, %14 : vector<8x64xf32>
    %143 = arith.mulf %131, %142 : vector<8x64xf32>
    %144 = arith.addf %140, %143 : vector<8x64xf32>
    %145 = math.tanh %144 : vector<8x64xf32>
    %cst_26 = arith.constant 1.000000e+00 : f32
    %146 = vector.broadcast %cst_26 : f32 to vector<8x64xf32>
    %147 = arith.subf %146, %139 : vector<8x64xf32>
    %148 = arith.mulf %147, %145 : vector<8x64xf32>
    %149 = arith.mulf %139, %121 : vector<8x64xf32>
    %150 = arith.addf %148, %149 : vector<8x64xf32>
    %151 = vector.extract_strided_slice %11 {offsets = [40, 0], sizes = [8, 192], strides = [1, 1]} : vector<64x192xf32> to vector<8x192xf32>
    %cst_27 = arith.constant dense<0.000000e+00> : vector<8x192xf32>
    %152 = tpu.matmul %150, %1, %cst_27 {dimension_numbers = #tpu.dot_dimension_numbers<[1], [0], [0], [1], [0, 0, 1, 1], [], []>} : vector<8x64xf32>, vector<64x192xf32>, vector<8x192xf32> -> vector<8x192xf32>
    %153 = vector.extract_strided_slice %151 {offsets = [0, 0], sizes = [8, 64], strides = [1, 1]} : vector<8x192xf32> to vector<8x64xf32>
    %154 = vector.extract_strided_slice %152 {offsets = [0, 0], sizes = [8, 64], strides = [1, 1]} : vector<8x192xf32> to vector<8x64xf32>
    %155 = arith.addf %153, %154 : vector<8x64xf32>
    %156 = arith.negf %155 : vector<8x64xf32>
    %157 = math.exp %156 : vector<8x64xf32>
    %cst_28 = arith.constant 1.000000e+00 : f32
    %158 = vector.broadcast %cst_28 : f32 to vector<8x64xf32>
    %159 = arith.addf %158, %157 : vector<8x64xf32>
    %160 = arith.divf %158, %159 : vector<8x64xf32>
    %161 = vector.extract_strided_slice %151 {offsets = [0, 64], sizes = [8, 64], strides = [1, 1]} : vector<8x192xf32> to vector<8x64xf32>
    %162 = vector.extract_strided_slice %152 {offsets = [0, 64], sizes = [8, 64], strides = [1, 1]} : vector<8x192xf32> to vector<8x64xf32>
    %163 = arith.addf %161, %162 : vector<8x64xf32>
    %164 = arith.negf %163 : vector<8x64xf32>
    %165 = math.exp %164 : vector<8x64xf32>
    %cst_29 = arith.constant 1.000000e+00 : f32
    %166 = vector.broadcast %cst_29 : f32 to vector<8x64xf32>
    %167 = arith.addf %166, %165 : vector<8x64xf32>
    %168 = arith.divf %166, %167 : vector<8x64xf32>
    %169 = vector.extract_strided_slice %151 {offsets = [0, 128], sizes = [8, 64], strides = [1, 1]} : vector<8x192xf32> to vector<8x64xf32>
    %170 = vector.extract_strided_slice %152 {offsets = [0, 128], sizes = [8, 64], strides = [1, 1]} : vector<8x192xf32> to vector<8x64xf32>
    %171 = arith.addf %170, %14 : vector<8x64xf32>
    %172 = arith.mulf %160, %171 : vector<8x64xf32>
    %173 = arith.addf %169, %172 : vector<8x64xf32>
    %174 = math.tanh %173 : vector<8x64xf32>
    %cst_30 = arith.constant 1.000000e+00 : f32
    %175 = vector.broadcast %cst_30 : f32 to vector<8x64xf32>
    %176 = arith.subf %175, %168 : vector<8x64xf32>
    %177 = arith.mulf %176, %174 : vector<8x64xf32>
    %178 = arith.mulf %168, %150 : vector<8x64xf32>
    %179 = arith.addf %177, %178 : vector<8x64xf32>
    %180 = vector.extract_strided_slice %11 {offsets = [48, 0], sizes = [8, 192], strides = [1, 1]} : vector<64x192xf32> to vector<8x192xf32>
    %cst_31 = arith.constant dense<0.000000e+00> : vector<8x192xf32>
    %181 = tpu.matmul %179, %1, %cst_31 {dimension_numbers = #tpu.dot_dimension_numbers<[1], [0], [0], [1], [0, 0, 1, 1], [], []>} : vector<8x64xf32>, vector<64x192xf32>, vector<8x192xf32> -> vector<8x192xf32>
    %182 = vector.extract_strided_slice %180 {offsets = [0, 0], sizes = [8, 64], strides = [1, 1]} : vector<8x192xf32> to vector<8x64xf32>
    %183 = vector.extract_strided_slice %181 {offsets = [0, 0], sizes = [8, 64], strides = [1, 1]} : vector<8x192xf32> to vector<8x64xf32>
    %184 = arith.addf %182, %183 : vector<8x64xf32>
    %185 = arith.negf %184 : vector<8x64xf32>
    %186 = math.exp %185 : vector<8x64xf32>
    %cst_32 = arith.constant 1.000000e+00 : f32
    %187 = vector.broadcast %cst_32 : f32 to vector<8x64xf32>
    %188 = arith.addf %187, %186 : vector<8x64xf32>
    %189 = arith.divf %187, %188 : vector<8x64xf32>
    %190 = vector.extract_strided_slice %180 {offsets = [0, 64], sizes = [8, 64], strides = [1, 1]} : vector<8x192xf32> to vector<8x64xf32>
    %191 = vector.extract_strided_slice %181 {offsets = [0, 64], sizes = [8, 64], strides = [1, 1]} : vector<8x192xf32> to vector<8x64xf32>
    %192 = arith.addf %190, %191 : vector<8x64xf32>
    %193 = arith.negf %192 : vector<8x64xf32>
    %194 = math.exp %193 : vector<8x64xf32>
    %cst_33 = arith.constant 1.000000e+00 : f32
    %195 = vector.broadcast %cst_33 : f32 to vector<8x64xf32>
    %196 = arith.addf %195, %194 : vector<8x64xf32>
    %197 = arith.divf %195, %196 : vector<8x64xf32>
    %198 = vector.extract_strided_slice %180 {offsets = [0, 128], sizes = [8, 64], strides = [1, 1]} : vector<8x192xf32> to vector<8x64xf32>
    %199 = vector.extract_strided_slice %181 {offsets = [0, 128], sizes = [8, 64], strides = [1, 1]} : vector<8x192xf32> to vector<8x64xf32>
    %200 = arith.addf %199, %14 : vector<8x64xf32>
    %201 = arith.mulf %189, %200 : vector<8x64xf32>
    %202 = arith.addf %198, %201 : vector<8x64xf32>
    %203 = math.tanh %202 : vector<8x64xf32>
    %cst_34 = arith.constant 1.000000e+00 : f32
    %204 = vector.broadcast %cst_34 : f32 to vector<8x64xf32>
    %205 = arith.subf %204, %197 : vector<8x64xf32>
    %206 = arith.mulf %205, %203 : vector<8x64xf32>
    %207 = arith.mulf %197, %179 : vector<8x64xf32>
    %208 = arith.addf %206, %207 : vector<8x64xf32>
    %209 = vector.extract_strided_slice %11 {offsets = [56, 0], sizes = [8, 192], strides = [1, 1]} : vector<64x192xf32> to vector<8x192xf32>
    %cst_35 = arith.constant dense<0.000000e+00> : vector<8x192xf32>
    %210 = tpu.matmul %208, %1, %cst_35 {dimension_numbers = #tpu.dot_dimension_numbers<[1], [0], [0], [1], [0, 0, 1, 1], [], []>} : vector<8x64xf32>, vector<64x192xf32>, vector<8x192xf32> -> vector<8x192xf32>
    %211 = vector.extract_strided_slice %209 {offsets = [0, 0], sizes = [8, 64], strides = [1, 1]} : vector<8x192xf32> to vector<8x64xf32>
    %212 = vector.extract_strided_slice %210 {offsets = [0, 0], sizes = [8, 64], strides = [1, 1]} : vector<8x192xf32> to vector<8x64xf32>
    %213 = arith.addf %211, %212 : vector<8x64xf32>
    %214 = arith.negf %213 : vector<8x64xf32>
    %215 = math.exp %214 : vector<8x64xf32>
    %cst_36 = arith.constant 1.000000e+00 : f32
    %216 = vector.broadcast %cst_36 : f32 to vector<8x64xf32>
    %217 = arith.addf %216, %215 : vector<8x64xf32>
    %218 = arith.divf %216, %217 : vector<8x64xf32>
    %219 = vector.extract_strided_slice %209 {offsets = [0, 64], sizes = [8, 64], strides = [1, 1]} : vector<8x192xf32> to vector<8x64xf32>
    %220 = vector.extract_strided_slice %210 {offsets = [0, 64], sizes = [8, 64], strides = [1, 1]} : vector<8x192xf32> to vector<8x64xf32>
    %221 = arith.addf %219, %220 : vector<8x64xf32>
    %222 = arith.negf %221 : vector<8x64xf32>
    %223 = math.exp %222 : vector<8x64xf32>
    %cst_37 = arith.constant 1.000000e+00 : f32
    %224 = vector.broadcast %cst_37 : f32 to vector<8x64xf32>
    %225 = arith.addf %224, %223 : vector<8x64xf32>
    %226 = arith.divf %224, %225 : vector<8x64xf32>
    %227 = vector.extract_strided_slice %209 {offsets = [0, 128], sizes = [8, 64], strides = [1, 1]} : vector<8x192xf32> to vector<8x64xf32>
    %228 = vector.extract_strided_slice %210 {offsets = [0, 128], sizes = [8, 64], strides = [1, 1]} : vector<8x192xf32> to vector<8x64xf32>
    %229 = arith.addf %228, %14 : vector<8x64xf32>
    %230 = arith.mulf %218, %229 : vector<8x64xf32>
    %231 = arith.addf %227, %230 : vector<8x64xf32>
    %232 = math.tanh %231 : vector<8x64xf32>
    %cst_38 = arith.constant 1.000000e+00 : f32
    %233 = vector.broadcast %cst_38 : f32 to vector<8x64xf32>
    %234 = arith.subf %233, %226 : vector<8x64xf32>
    %235 = arith.mulf %234, %232 : vector<8x64xf32>
    %236 = arith.mulf %226, %208 : vector<8x64xf32>
    %237 = arith.addf %235, %236 : vector<8x64xf32>
    %238 = vector.extract_strided_slice %237 {offsets = [0, 0], sizes = [1, 32], strides = [1, 1]} : vector<8x64xf32> to vector<1x32xf32>
    %239 = vector.extract_strided_slice %237 {offsets = [1, 32], sizes = [4, 32], strides = [1, 1]} : vector<8x64xf32> to vector<4x32xf32>
    %240 = vector.extract_strided_slice %2 {offsets = [0, 0], sizes = [64, 48], strides = [1, 1]} : vector<72x128xf32> to vector<64x48xf32>
    %241 = vector.extract_strided_slice %2 {offsets = [0, 48], sizes = [48, 32], strides = [1, 1]} : vector<72x128xf32> to vector<48x32xf32>
    %242 = vector.extract_strided_slice %2 {offsets = [0, 80], sizes = [32, 16], strides = [1, 1]} : vector<72x128xf32> to vector<32x16xf32>
    %243 = vector.extract_strided_slice %2 {offsets = [0, 96], sizes = [16, 1], strides = [1, 1]} : vector<72x128xf32> to vector<16x1xf32>
    %244 = vector.extract_strided_slice %2 {offsets = [64, 0], sizes = [1, 48], strides = [1, 1]} : vector<72x128xf32> to vector<1x48xf32>
    %245 = vector.extract_strided_slice %2 {offsets = [65, 0], sizes = [1, 32], strides = [1, 1]} : vector<72x128xf32> to vector<1x32xf32>
    %246 = vector.extract_strided_slice %2 {offsets = [66, 0], sizes = [1, 16], strides = [1, 1]} : vector<72x128xf32> to vector<1x16xf32>
    %247 = vector.extract_strided_slice %2 {offsets = [67, 0], sizes = [1, 1], strides = [1, 1]} : vector<72x128xf32> to vector<1x1xf32>
    %248 = vector.extract_strided_slice %240 {offsets = [32, 0], sizes = [32, 48], strides = [1, 1]} : vector<64x48xf32> to vector<32x48xf32>
    %cst_39 = arith.constant dense<0.000000e+00> : vector<4x48xf32>
    %249 = tpu.matmul %239, %248, %cst_39 {dimension_numbers = #tpu.dot_dimension_numbers<[1], [0], [0], [1], [0, 0, 1, 1], [], []>} : vector<4x32xf32>, vector<32x48xf32>, vector<4x48xf32> -> vector<4x48xf32>
    %250 = vector.extract_strided_slice %240 {offsets = [0, 0], sizes = [32, 48], strides = [1, 1]} : vector<64x48xf32> to vector<32x48xf32>
    %cst_40 = arith.constant dense<0.000000e+00> : vector<1x48xf32>
    %251 = tpu.matmul %238, %250, %cst_40 {dimension_numbers = #tpu.dot_dimension_numbers<[1], [0], [0], [1], [0, 0, 1, 1], [], []>} : vector<1x32xf32>, vector<32x48xf32>, vector<1x48xf32> -> vector<1x48xf32>
    %252 = vector.broadcast %251 : vector<1x48xf32> to vector<4x48xf32>
    %253 = arith.addf %249, %252 : vector<4x48xf32>
    %254 = vector.broadcast %244 : vector<1x48xf32> to vector<4x48xf32>
    %255 = arith.addf %253, %254 : vector<4x48xf32>
    %cst_41 = arith.constant 0.000000e+00 : f32
    %256 = vector.broadcast %cst_41 : f32 to vector<4x48xf32>
    %257 = arith.maximumf %255, %256 : vector<4x48xf32>
    %cst_42 = arith.constant dense<0.000000e+00> : vector<4x32xf32>
    %258 = tpu.matmul %257, %241, %cst_42 {dimension_numbers = #tpu.dot_dimension_numbers<[1], [0], [0], [1], [0, 0, 1, 1], [], []>} : vector<4x48xf32>, vector<48x32xf32>, vector<4x32xf32> -> vector<4x32xf32>
    %259 = vector.broadcast %245 : vector<1x32xf32> to vector<4x32xf32>
    %260 = arith.addf %258, %259 : vector<4x32xf32>
    %cst_43 = arith.constant 0.000000e+00 : f32
    %261 = vector.broadcast %cst_43 : f32 to vector<4x32xf32>
    %262 = arith.maximumf %260, %261 : vector<4x32xf32>
    %cst_44 = arith.constant dense<0.000000e+00> : vector<4x16xf32>
    %263 = tpu.matmul %262, %242, %cst_44 {dimension_numbers = #tpu.dot_dimension_numbers<[1], [0], [0], [1], [0, 0, 1, 1], [], []>} : vector<4x32xf32>, vector<32x16xf32>, vector<4x16xf32> -> vector<4x16xf32>
    %264 = vector.broadcast %246 : vector<1x16xf32> to vector<4x16xf32>
    %265 = arith.addf %263, %264 : vector<4x16xf32>
    %cst_45 = arith.constant 0.000000e+00 : f32
    %266 = vector.broadcast %cst_45 : f32 to vector<4x16xf32>
    %267 = arith.maximumf %265, %266 : vector<4x16xf32>
    %cst_46 = arith.constant dense<0.000000e+00> : vector<4x1xf32>
    %268 = tpu.matmul %267, %243, %cst_46 {dimension_numbers = #tpu.dot_dimension_numbers<[1], [0], [0], [1], [0, 0, 1, 1], [], []>} : vector<4x16xf32>, vector<16x1xf32>, vector<4x1xf32> -> vector<4x1xf32>
    %269 = vector.broadcast %247 : vector<1x1xf32> to vector<4x1xf32>
    %270 = arith.addf %268, %269 : vector<4x1xf32>
    %c0_47 = arith.constant 0 : index
    %c0_48 = arith.constant 0 : index
    %271 = vector.load %arg3[%c0_47, %c0_48] : memref<4x1xf32, #tpu.memory_space<vmem>>, vector<4x1xf32>
    tpu.vector_store %arg3[%c0_47, %c0_48], %270 {strides = array<i32>} : memref<4x1xf32, #tpu.memory_space<vmem>>, vector<4x1xf32>,
    return
  }
}

</mosaic_0001>

<bundles_post_ra>
// kernel: naive_net_forward.1
= control target key start
LH: loop header
LB: loop body
LE: loop exit
PB: predicated region body
PF: predicated region fallthrough
CT: control target
= control target key end

     0   :  { %8 = vsyncpa [#allocation3], 0  ;;  %s1776_s12 = smov [#allocation2]   ;;  %s2060_s0 = inlined_call_operand.vmem [shape: s32[64,1], index: 0, kind: input, shape index: {}]   ;;  %s2061_s1 = inlined_call_operand.hbm [shape: f32[192,192], index: 1, kind: input, shape index: {}]   ;;  %s2062_s2 = inlined_call_operand.vmem [shape: f32[72,128], index: 2, kind: input, shape index: {}]   ;;  %s2063_s3 = inlined_call_operand.vmem [shape: f32[4,1], index: 3, kind: output, shape index: {}]  }
   0x1   :  { %s16_s13 = sshll.u32 %s1776_s12, 4  ;;  %s1752_s16 = scalar_lea.hbm %s2061_s1, 6144  ;;  %s17_s13 = int_to_ptr.vmem [resolvable:$true] %s16_s13 }
   0x2   :  { %p1753_p0 = scmp.ne.s32.totalorder %s2061_s1, %s1752_s16  ;;  %p1756_p1 = scmp.lt.u32.totalorder %s1752_s16, %s2061_s1 }
   0x4   :  { %p1758_p2 = pnand %p1756_p1, %p1753_p0 }
   0x6   :  { %1761 = shalt.err (!%p1758_p2)
}
   0x7   :  { %s1762_s21 = scalar_lea.vmem %s17_s13, 6144  ;;  %p1767_p4 = scmp.lt.s32.totalorder %s17_s13, %s17_s13 }
   0x8   :  { %p1763_p3 = scmp.ne.s32.totalorder %s17_s13, %s1762_s21  ;;  %p1768_p5 = scmp.lt.s32.totalorder %s1762_s21, %s1762_s21 }
   0xa   :  { %p1769_p6 = por %p1768_p5, %p1767_p4 }
   0xc   :  { %p1770_p7 = pnand %p1769_p6, %p1763_p3 }
   0xe   :  { %1773 = shalt.err (!%p1770_p7)
}
   0xf   :  { %s1777_s22 = smov 256   ;;  %s1778_s23 = smov 16  }
  0x10   :  { %22 = dma.hbm_to_vmem [thread:$0]  %s2061_s1, 6144, %s17_s13, [#allocation3], %s1777_s22, %s1777_s22, %s1778_s23  }
  0x11   :  { %1774 = dma.done.wait [#allocation3], 6144  }
  0x12   :  { %1775 = vsyncadd [#allocation3], 4294961152  ;;  %v1779_v0 = vmov 0   ;;  %v85_v1 = vld [vmem:[%s2060_s0] sm:$0xff]  ;;  %v29_v2 = vld [vmem:[#allocation2 + $0x8] sm:$0xff]  ;;  %v1780_v8 = vmov 0.0   ;;  %v93_v51 = vlaneseq }
  0x13   :  { %1672 = vset.pattern.permute.xlu0 %v1779_v0  ;;  %1673 = vset.pattern.permute.xlu1 %v1779_v0  ;;  %v31_v3 = vld [vmem:[#allocation2 + $0x18] sm:$0xff]  ;;  %v28_v5 = vld [vmem:[#allocation2] sm:$0xff]  ;;  %v30_v6 = vld [vmem:[#allocation2 + $0x10] sm:$0xff]  ;;  %v1781_v54 = vmov 1.0   ;;  %s1782_s4 = smov 64   ;;  %vm270_vm2 = vcmask 523264  }
  0x14   :  { %96 = vperm.xlu0 %1672, %v85_v1   ;;  %v1486_v4 = vpack.c.bf16 %v31_v3, %v29_v2  ;;  %v33_v7 = vld [vmem:[#allocation2 + $0x28] sm:$0xff]  ;;  %199 = vmatprep.mubr.f32.mxu0 %v1780_v8  ;;  %v1488_v9 = vpack.c.bf16 %v30_v6, %v28_v5  ;;  %v35_v10 = vld [vmem:[#allocation2 + $0x38] sm:$0xff]  ;;  %v32_v11 = vld [vmem:[#allocation2 + $0x20] sm:$0xff]  ;;  %v1825_v52 = vand.u32 127, %v93_v51  ;;  %v1833_v61 = vshrl.u32 %v93_v51, 7  ;;  %s1786_s5 = smov 80  }
  0x15   :  { %v34_v12 = vld [vmem:[#allocation2 + $0x30] sm:$0xff]  ;;  %337 = vmatprep.mubr.f32.mxu1 %v1780_v8  ;;  %v1490_v13 = vpack.c.bf16 %v35_v10, %v33_v7  ;;  %v37_v14 = vld [vmem:[#allocation2 + $0x48] sm:$0xff]  ;;  %v39_v15 = vld [vmem:[#allocation2 + $0x58] sm:$0xff]  ;;  %vm1784_vm9 = vmmov 0   ;;  %vm936_vm10 = vcmask 261120   ;;  %vm1122_vm11 = vcmask 392192  }
  0x16   :  { %1487 = vmatprep.subr.bf16.mxu0 %v1486_v4  ;;  %v1492_v16 = vpack.c.bf16 %v34_v12, %v32_v11  ;;  %v1494_v17 = vpack.c.bf16 %v39_v15, %v37_v14  ;;  %v36_v18 = vld [vmem:[#allocation2 + $0x40] sm:$0xff]  ;;  %v38_v19 = vld [vmem:[#allocation2 + $0x50] sm:$0xff]  ;;  %v41_v20 = vld [vmem:[#allocation2 + $0x68] sm:$0xff]  ;;  %v250_v62 = vsub.s32 4, %v1833_v61  ;;  %vm1297_vm12 = vcmask 130048  }
  0x17   :  { %1489 = vmatpush1.bf16.msra.mxu0 %v1488_v9  ;;  %v43_v21 = vld [vmem:[#allocation2 + $0x78] sm:$0xff]  ;;  %v1496_v22 = vpack.c.bf16 %v38_v19, %v36_v18  ;;  %v40_v24 = vld [vmem:[#allocation2 + $0x60] sm:$0xff]  ;;  %v42_v25 = vld [vmem:[#allocation2 + $0x70] sm:$0xff]  ;;  %vm1371_vm13 = vcmask 3072  }
  0x18   :  { %1491 = vmatprep.subr.bf16.mxu0 %v1490_v13  ;;  %v1498_v23 = vpack.c.bf16 %v43_v21, %v41_v20  ;;  %v45_v26 = vld [vmem:[#allocation2 + $0x88] sm:$0xff]  ;;  %v47_v27 = vld [vmem:[#allocation2 + $0x98] sm:$0xff]  ;;  %v1500_v28 = vpack.c.bf16 %v42_v25, %v40_v24  ;;  %v44_v30 = vld [vmem:[#allocation2 + $0x80] sm:$0xff] }
  0x19   :  { %v1502_v29 = vpack.c.bf16 %v47_v27, %v45_v26  ;;  %v46_v31 = vld [vmem:[#allocation2 + $0x90] sm:$0xff]  ;;  %v49_v32 = vld [vmem:[#allocation2 + $0xa8] sm:$0xff]  ;;  %v51_v33 = vld [vmem:[#allocation2 + $0xb8] sm:$0xff] }
  0x1a   :  { %v1504_v34 = vpack.c.bf16 %v46_v31, %v44_v30  ;;  %v1506_v35 = vpack.c.bf16 %v51_v33, %v49_v32  ;;  %v48_v36 = vld [vmem:[#allocation2 + $0xa0] sm:$0xff]  ;;  %v50_v37 = vld [vmem:[#allocation2 + $0xb0] sm:$0xff]  ;;  %v53_v38 = vld [vmem:[#allocation2 + $0xc8] sm:$0xff] }
  0x1b   :  { %1493 = vmatpush1.bf16.msra.mxu0 %v1492_v16  ;;  %v55_v39 = vld [vmem:[#allocation2 + $0xd8] sm:$0xff]  ;;  %v1508_v40 = vpack.c.bf16 %v50_v37, %v48_v36  ;;  %v52_v42 = vld [vmem:[#allocation2 + $0xc0] sm:$0xff]  ;;  %v54_v43 = vld [vmem:[#allocation2 + $0xd0] sm:$0xff] }
  0x1c   :  { %1495 = vmatprep.subr.bf16.mxu0 %v1494_v17  ;;  %v1510_v41 = vpack.c.bf16 %v55_v39, %v53_v38  ;;  %v57_v44 = vld [vmem:[#allocation2 + $0xe8] sm:$0xff]  ;;  %v59_v45 = vld [vmem:[#allocation2 + $0xf8] sm:$0xff]  ;;  %v1512_v46 = vpack.c.bf16 %v54_v43, %v52_v42  ;;  %v56_v48 = vld [vmem:[#allocation2 + $0xe0] sm:$0xff] }
  0x1d   :  { %v1514_v47 = vpack.c.bf16 %v59_v45, %v57_v44  ;;  %v58_v49 = vld [vmem:[#allocation2 + $0xf0] sm:$0xff]  ;;  %v86_v55 = vld [vmem:[%s2060_s0 + $0x8] sm:$0xff]  ;;  %v1839_v63 = vld [vmem:[%s2062_s2 + $0x40] sm:$0xff] }
  0x1e   :  { %v1516_v50 = vpack.c.bf16 %v58_v49, %v56_v48  ;;  %99 = vperm.xlu1 %1673, %v86_v55   ;;  %v1842_v0 = vrot.slane %v1839_v63, %v250_v62  ;;  %v61_v4 = vld [vmem:[#allocation2 + $0x108] sm:$0xff]  ;;  %v63_v5 = vld [vmem:[#allocation2 + $0x118] sm:$0xff]  ;;  %v60_v6 = vld [vmem:[#allocation2 + $0x100] sm:$0xff] }
  0x1f   :  { %1497 = vmatpush1.bf16.msra.mxu0 %v1496_v22  ;;  %v1845_v7 = vpack.c.bf16 %v63_v5, %v61_v4  ;;  %v62_v9 = vld [vmem:[#allocation2 + $0x110] sm:$0xff]  ;;  %v65_v10 = vld [vmem:[#allocation2 + $0x128] sm:$0xff]  ;;  %v67_v11 = vld [vmem:[#allocation2 + $0x138] sm:$0xff] }
  0x20   :  { %1499 = vmatprep.subr.bf16.mxu0 %v1498_v23  ;;  %v1847_v12 = vpack.c.bf16 %v62_v9, %v60_v6  ;;  %v1849_v13 = vpack.c.bf16 %v67_v11, %v65_v10  ;;  %v64_v14 = vld [vmem:[#allocation2 + $0x120] sm:$0xff]  ;;  %v66_v15 = vld [vmem:[#allocation2 + $0x130] sm:$0xff]  ;;  %v69_v16 = vld [vmem:[#allocation2 + $0x148] sm:$0xff] }
  0x21   :  { %1519 = vmatprep.subr.bf16.mxu1 %v1845_v7  ;;  %v71_v17 = vld [vmem:[#allocation2 + $0x158] sm:$0xff]  ;;  %v1854_v18 = vpack.c.bf16 %v66_v15, %v64_v14  ;;  %v68_v20 = vld [vmem:[#allocation2 + $0x140] sm:$0xff]  ;;  %v70_v21 = vld [vmem:[#allocation2 + $0x150] sm:$0xff] }
  0x22   :  { %1521 = vmatpush1.bf16.msra.mxu1 %v1847_v12  ;;  %v1858_v19 = vpack.c.bf16 %v71_v17, %v69_v16  ;;  %v73_v23 = vld [vmem:[#allocation2 + $0x168] sm:$0xff]  ;;  %v75_v24 = vld [vmem:[#allocation2 + $0x178] sm:$0xff]  ;;  %v1863_v26 = vpack.c.bf16 %v70_v21, %v68_v20 }
  0x23   :  { %1501 = vmatpush1.bf16.msra.mxu0 %v1500_v28  ;;  %1523 = vmatprep.subr.bf16.mxu1 %v1849_v13  ;;  %v1869_v27 = vpack.c.bf16 %v75_v24, %v73_v23  ;;  %v72_v28 = vld [vmem:[#allocation2 + $0x160] sm:$0xff] }
  0x24   :  { %1503 = vmatprep.subr.bf16.mxu0 %v1502_v29  ;;  %v74_v29 = vld [vmem:[#allocation2 + $0x170] sm:$0xff] }
  0x25   :  { %v1874_v30 = vpack.c.bf16 %v74_v29, %v72_v28  ;;  %v91_v28 = vld [vmem:[%s2060_s0 + $0x30] sm:$0xff] }
  0x26   :  { %1525 = vmatpush1.bf16.msra.mxu1 %v1854_v18 }
  0x27   :  { %1505 = vmatpush1.bf16.msra.mxu0 %v1504_v34  ;;  %1527 = vmatprep.subr.bf16.mxu1 %v1858_v19  ;;  %v87_v34 = vld [vmem:[%s2060_s0 + $0x10] sm:$0xff] }
  0x28   :  { %1507 = vmatprep.subr.bf16.mxu0 %v1506_v35 }
  0x2a   :  { %1529 = vmatpush1.bf16.msra.mxu1 %v1863_v26 }
  0x2b   :  { %1509 = vmatpush1.bf16.msra.mxu0 %v1508_v40  ;;  %1531 = vmatprep.subr.bf16.mxu1 %v1869_v27 }
  0x2c   :  { %1511 = vmatprep.subr.bf16.mxu0 %v1510_v41 }
  0x2e   :  { %1533 = vmatpush1.bf16.msra.mxu1 %v1874_v30 }
  0x2f   :  { %1513 = vmatpush1.bf16.msra.mxu0 %v1512_v46  ;;  %1535 = vmatprep.subr.bf16.mxu1 %v1845_v7 }
  0x30   :  { %1515 = vmatprep.subr.bf16.mxu0 %v1514_v47 }
  0x33   :  { %1517 = vmatpush1.bf16.msra.mxu0 %v1516_v50 }
  0x34   :  { %1567 = vmatprep.subr.bf16.mxu0 %v1845_v7 }
  0x93   :  { %v97_v53 = vpop.permute.xlu0 %96 }
  0x94   :  { %vm119_vm0 = vcmp.eq.s32.totalorder %v1825_v52, %v97_v53 }
  0x95   :  { %1378 = vmatmul.mubr.msk.f32.vlgmr.msra.gmra.mrb[0].mxu0 %vm119_vm0, %v1781_v54 }
  0x96   :  { %205 = vmatprep.mubr.f32.mxu0 %v1780_v8  ;;  %1569 = vmatpush1.bf16.msra.mxu0 %v1847_v12 }
  0x97   :  { %1571 = vmatprep.subr.bf16.mxu0 %v1849_v13 }
  0x9a   :  { %1573 = vmatpush1.bf16.msra.mxu0 %v1854_v18 }
  0x9b   :  { %1575 = vmatprep.subr.bf16.mxu0 %v1858_v19 }
  0x9d   :  { %v100_v25 = vpop.permute.xlu1 %99 }
  0x9e   :  { %vm120_vm1 = vcmp.eq.s32.totalorder %v1825_v52, %v100_v25  ;;  %1577 = vmatpush1.bf16.msra.mxu0 %v1863_v26  ;;  %v89_v25 = vld [vmem:[%s2060_s0 + $0x20] sm:$0xff] }
  0x9f   :  { %1379 = vmatmul.mubr.msk.f32.gmra.mrb[2].mxu0 %vm120_vm1, %v1781_v54  ;;  %1579 = vmatprep.subr.bf16.mxu0 %v1869_v27 }
  0xa0   :  { %211 = vmatprep.mubr.f32.mxu0 %v1780_v8 }
  0xa2   :  { %1581 = vmatpush1.bf16.msra.mxu0 %v1874_v30 }
  0xa3   :  { %1599 = vmatprep.subr.bf16.mxu0 %v1845_v7 }
 0x168   :  { %v201_v56 = vpop.f32.mrb[0].mxu0 }
 0x169   :  { %v1386_v57 = vmul.f32 -1.442695, %v201_v56  ;;  %v203_v58 = vpop.f32.mrb[1].mxu0 }
 0x16b   :  { %1704 = vpow2.f32 %v1386_v57 }
 0x172   :  { %v207_v35 = vpop.f32.mrb[2].mxu0 }
 0x173   :  { %v209_v36 = vpop.f32.mrb[3].mxu0 }
 0x175   :  { %v1705_v59 = vpop.eup %1704 }
 0x176   :  { %v255_v60 = vadd.f32 1.0, %v1705_v59  ;;  %v88_v59 = vld [vmem:[%s2060_s0 + $0x18] sm:$0xff] }
 0x178   :  { %1706 = vrcp.f32 %v255_v60 }
 0x182   :  { %v1707_v1 = vpop.eup %1706 }
 0x183   :  { %v258_v2 = vmul.f32 %v1707_v1, %v1842_v0  ;;  %v261_v31 = vsub.f32 1.0, %v1707_v1 }
 0x185   :  { %v259_v3 = vadd.f32 %v258_v2, %v203_v58 }
 0x187   :  { %1708 = vtanh.f32 %v259_v3 }
 0x191   :  { %v1709_v22 = vpop.eup %1708 }
 0x192   :  { %263 = vrot.lane.b32.xlu0 %v1709_v22, %s1782_s4 }
 0x204   :  { %v264_v32 = vpop.permute.xlu0 %263 }
 0x205   :  { %v266_v33 = vmul.f32 %v264_v32, %v261_v31 }
 0x207   :  { %268 = vrot.lane.b32.xlu1 %v266_v33, %s1782_s4 }
 0x20b   :  { %102 = vperm.xlu1 %1673, %v87_v34  }
 0x279   :  { %v269_v37 = vpop.permute.xlu1 %268 }
 0x27a   :  { %1387 = vmatmul.mubr.msk.f32.vlgmr.msra.gmra.mrb[0].mxu1 %vm270_vm2, %v269_v37 }
 0x27b   :  { %1537 = vmatpush1.bf16.msra.mxu1 %v1847_v12  ;;  %432 = vmatprep.mubr.f32.mxu1 %v1780_v8 }
 0x27c   :  { %1539 = vmatprep.subr.bf16.mxu1 %v1849_v13 }
 0x27f   :  { %1541 = vmatpush1.bf16.msra.mxu1 %v1854_v18 }
 0x280   :  { %1543 = vmatprep.subr.bf16.mxu1 %v1858_v19 }
 0x283   :  { %1545 = vmatpush1.bf16.msra.mxu1 %v1863_v26 }
 0x284   :  { %1547 = vmatprep.subr.bf16.mxu1 %v1869_v27 }
 0x287   :  { %1549 = vmatpush1.bf16.msra.mxu1 %v1874_v30 }
 0x288   :  { %1551 = vmatprep.subr.bf16.mxu1 %v1845_v7 }
 0x28a   :  { %v103_v38 = vpop.permute.xlu1 %102 }
 0x28b   :  { %vm121_vm3 = vcmp.eq.s32.totalorder %v1825_v52, %v103_v38 }
 0x28c   :  { %1380 = vmatmul.mubr.msk.f32.gmra.mrb[4].mxu0 %vm121_vm3, %v1781_v54 }
 0x28d   :  { %217 = vmatprep.mubr.f32.mxu0 %v1780_v8 }
 0x34d   :  { %v339_v39 = vpop.f32.mrb[0].mxu1 }
 0x34e   :  { %v344_v40 = vadd.f32 %v339_v39, %v207_v35  ;;  %v341_v41 = vpop.f32.mrb[1].mxu1 }
 0x34f   :  { %v351_v47 = vadd.f32 %v341_v41, %v1842_v0 }
 0x350   :  { %v1388_v42 = vmul.f32 -1.442695, %v344_v40 }
 0x352   :  { %1710 = vpow2.f32 %v1388_v42 }
 0x35c   :  { %v1711_v43 = vpop.eup %1710 }
 0x35d   :  { %v348_v44 = vadd.f32 1.0, %v1711_v43 }
 0x35f   :  { %1712 = vrcp.f32 %v348_v44  ;;  %v213_v45 = vpop.f32.mrb[4].mxu0  ;;  %v90_v44 = vld [vmem:[%s2060_s0 + $0x28] sm:$0xff] }
 0x360   :  { %v215_v46 = vpop.f32.mrb[5].mxu0 }
 0x369   :  { %v1713_v48 = vpop.eup %1712 }
 0x36a   :  { %v352_v49 = vmul.f32 %v1713_v48, %v351_v47  ;;  %v355_v53 = vsub.f32 1.0, %v1713_v48  ;;  %v361_v56 = vmul.f32 %v1713_v48, %v266_v33 }
 0x36c   :  { %v353_v50 = vadd.f32 %v352_v49, %v209_v36 }
 0x36e   :  { %1714 = vtanh.f32 %v353_v50 }
 0x378   :  { %v1715_v51 = vpop.eup %1714 }
 0x379   :  { %357 = vrot.lane.b32.xlu0 %v1715_v51, %s1782_s4 }
 0x3eb   :  { %v358_v55 = vpop.permute.xlu0 %357 }
 0x3ec   :  { %v360_v57 = vmul.f32 %v358_v55, %v355_v53 }
 0x3ee   :  { %v362_v58 = vadd.f32 %v361_v56, %v360_v57 }
 0x3f0   :  { %364 = vrot.lane.b32.xlu0 %v362_v58, %s1782_s4 }
 0x3f4   :  { %105 = vperm.xlu0 %1672, %v88_v59  }
 0x462   :  { %v365_v60 = vpop.permute.xlu0 %364 }
 0x463   :  { %1389 = vmatmul.mubr.msk.f32.vlgmr.msra.gmra.mrb[2].mxu1 %vm270_vm2, %v365_v60 }
 0x464   :  { %1553 = vmatpush1.bf16.msra.mxu1 %v1847_v12  ;;  %527 = vmatprep.mubr.f32.mxu1 %v1780_v8 }
 0x465   :  { %1555 = vmatprep.subr.bf16.mxu1 %v1849_v13 }
 0x468   :  { %1557 = vmatpush1.bf16.msra.mxu1 %v1854_v18 }
 0x469   :  { %1559 = vmatprep.subr.bf16.mxu1 %v1858_v19 }
 0x46c   :  { %1561 = vmatpush1.bf16.msra.mxu1 %v1863_v26 }
 0x46d   :  { %1563 = vmatprep.subr.bf16.mxu1 %v1869_v27 }
 0x470   :  { %1565 = vmatpush1.bf16.msra.mxu1 %v1874_v30 }
 0x471   :  { %1583 = vmatprep.subr.bf16.mxu1 %v1845_v7 }
 0x473   :  { %v106_v62 = vpop.permute.xlu0 %105 }
 0x474   :  { %vm122_vm4 = vcmp.eq.s32.totalorder %v1825_v52, %v106_v62 }
 0x475   :  { %1381 = vmatmul.mubr.msk.f32.gmra.mrb[6].mxu0 %vm122_vm4, %v1781_v54 }
 0x476   :  { %223 = vmatprep.mubr.f32.mxu0 %v1780_v8 }
 0x536   :  { %v434_v1 = vpop.f32.mrb[2].mxu1 }
 0x537   :  { %v439_v2 = vadd.f32 %v434_v1, %v213_v45  ;;  %v436_v3 = vpop.f32.mrb[3].mxu1  ;;  %v92_v45 = vld [vmem:[%s2060_s0 + $0x38] sm:$0xff] }
 0x538   :  { %v446_v11 = vadd.f32 %v436_v3, %v1842_v0 }
 0x539   :  { %v1390_v4 = vmul.f32 -1.442695, %v439_v2 }
 0x53b   :  { %1716 = vpow2.f32 %v1390_v4 }
 0x545   :  { %v1717_v5 = vpop.eup %1716 }
 0x546   :  { %v443_v6 = vadd.f32 1.0, %v1717_v5 }
 0x548   :  { %1718 = vrcp.f32 %v443_v6  ;;  %v219_v9 = vpop.f32.mrb[6].mxu0 }
 0x549   :  { %v221_v10 = vpop.f32.mrb[7].mxu0 }
 0x552   :  { %v1719_v14 = vpop.eup %1718 }
 0x553   :  { %v447_v15 = vmul.f32 %v1719_v14, %v446_v11  ;;  %v450_v20 = vsub.f32 1.0, %v1719_v14  ;;  %v456_v22 = vmul.f32 %v1719_v14, %v362_v58 }
 0x555   :  { %v448_v16 = vadd.f32 %v447_v15, %v215_v46 }
 0x557   :  { %1720 = vtanh.f32 %v448_v16 }
 0x561   :  { %v1721_v17 = vpop.eup %1720 }
 0x562   :  { %452 = vrot.lane.b32.xlu1 %v1721_v17, %s1782_s4 }
 0x5d4   :  { %v453_v21 = vpop.permute.xlu1 %452 }
 0x5d5   :  { %v455_v23 = vmul.f32 %v453_v21, %v450_v20 }
 0x5d7   :  { %v457_v24 = vadd.f32 %v456_v22, %v455_v23 }
 0x5d9   :  { %459 = vrot.lane.b32.xlu1 %v457_v24, %s1782_s4 }
 0x5dd   :  { %108 = vperm.xlu1 %1673, %v89_v25  }
 0x5e1   :  { %114 = vperm.xlu1 %1673, %v91_v28  }
 0x64b   :  { %v460_v29 = vpop.permute.xlu1 %459 }
 0x64c   :  { %1391 = vmatmul.mubr.msk.f32.vlgmr.msra.gmra.mrb[4].mxu1 %vm270_vm2, %v460_v29 }
 0x64d   :  { %1585 = vmatpush1.bf16.msra.mxu1 %v1847_v12  ;;  %717 = vmatprep.mubr.f32.mxu1 %v1780_v8 }
 0x64e   :  { %1587 = vmatprep.subr.bf16.mxu1 %v1849_v13 }
 0x651   :  { %1589 = vmatpush1.bf16.msra.mxu1 %v1854_v18 }
 0x652   :  { %1591 = vmatprep.subr.bf16.mxu1 %v1858_v19 }
 0x655   :  { %1593 = vmatpush1.bf16.msra.mxu1 %v1863_v26 }
 0x656   :  { %1595 = vmatprep.subr.bf16.mxu1 %v1869_v27 }
 0x659   :  { %1597 = vmatpush1.bf16.msra.mxu1 %v1874_v30 }
 0x65a   :  { %1615 = vmatprep.subr.bf16.mxu1 %v1845_v7 }
 0x65c   :  { %v109_v31 = vpop.permute.xlu1 %108 }
 0x65d   :  { %vm123_vm5 = vcmp.eq.s32.totalorder %v1825_v52, %v109_v31 }
 0x65e   :  { %1382 = vmatmul.mubr.msk.f32.gmra.mrb[8].mxu0 %vm123_vm5, %v1781_v54 }
 0x65f   :  { %229 = vmatprep.mubr.f32.mxu0 %v1780_v8 }
 0x660   :  { %v115_v53 = vpop.permute.xlu1 %114 }
 0x661   :  { %vm125_vm7 = vcmp.eq.s32.totalorder %v1825_v52, %v115_v53 }
 0x71f   :  { %v529_v32 = vpop.f32.mrb[4].mxu1 }
 0x720   :  { %v534_v33 = vadd.f32 %v529_v32, %v219_v9  ;;  %v531_v34 = vpop.f32.mrb[5].mxu1 }
 0x721   :  { %v541_v40 = vadd.f32 %v531_v34, %v1842_v0 }
 0x722   :  { %v1392_v35 = vmul.f32 -1.442695, %v534_v33 }
 0x724   :  { %1722 = vpow2.f32 %v1392_v35 }
 0x72e   :  { %v1723_v36 = vpop.eup %1722 }
 0x72f   :  { %v538_v37 = vadd.f32 1.0, %v1723_v36 }
 0x731   :  { %1724 = vrcp.f32 %v538_v37  ;;  %v225_v38 = vpop.f32.mrb[8].mxu0 }
 0x732   :  { %v227_v39 = vpop.f32.mrb[9].mxu0 }
 0x73b   :  { %v1725_v7 = vpop.eup %1724 }
 0x73c   :  { %v542_v41 = vmul.f32 %v1725_v7, %v541_v40  ;;  %v545_v46 = vsub.f32 1.0, %v1725_v7  ;;  %v551_v48 = vmul.f32 %v1725_v7, %v457_v24 }
 0x73e   :  { %v543_v42 = vadd.f32 %v542_v41, %v221_v10 }
 0x740   :  { %1726 = vtanh.f32 %v543_v42 }
 0x74a   :  { %v1727_v43 = vpop.eup %1726 }
 0x74b   :  { %547 = vrot.lane.b32.xlu0 %v1727_v43, %s1782_s4 }
 0x74f   :  { %111 = vperm.xlu0 %1672, %v90_v44  }
 0x753   :  { %117 = vperm.xlu0 %1672, %v92_v45  }
 0x7bd   :  { %v548_v47 = vpop.permute.xlu0 %547 }
 0x7be   :  { %v550_v49 = vmul.f32 %v548_v47, %v545_v46 }
 0x7c0   :  { %v552_v50 = vadd.f32 %v551_v48, %v550_v49 }
 0x7c2   :  { %554 = vrot.lane.b32.xlu1 %v552_v50, %s1782_s4 }
 0x7ce   :  { %v112_v51 = vpop.permute.xlu0 %111 }
 0x7cf   :  { %vm124_vm6 = vcmp.eq.s32.totalorder %v1825_v52, %v112_v51 }
 0x7d0   :  { %1383 = vmatmul.mubr.msk.f32.gmra.mrb[10].mxu0 %vm124_vm6, %v1781_v54 }
 0x7d1   :  { %235 = vmatprep.mubr.f32.mxu0 %v1780_v8 }
 0x7d2   :  { %v118_v55 = vpop.permute.xlu0 %117 }
 0x7d3   :  { %vm126_vm8 = vcmp.eq.s32.totalorder %v1825_v52, %v118_v55 }
 0x7d4   :  { %1384 = vmatmul.mubr.msk.f32.gmra.mrb[12].mxu0 %vm125_vm7, %v1781_v54 }
 0x7d5   :  { %241 = vmatprep.mubr.f32.mxu0 %v1780_v8 }
 0x7d8   :  { %1385 = vmatmul.mubr.msk.f32.gmra.mrb[14].mxu0 %vm126_vm8, %v1781_v54 }
 0x7d9   :  { %622 = vmatprep.mubr.f32.mxu0 %v1780_v8 }
 0x834   :  { %v555_v56 = vpop.permute.xlu1 %554 }
 0x835   :  { %1393 = vmatmul.mubr.msk.f32.vlgmr.msra.gmra.mrb[16].mxu0 %vm270_vm2, %v555_v56 }
 0x836   :  { %1601 = vmatpush1.bf16.msra.mxu0 %v1847_v12  ;;  %812 = vmatprep.mubr.f32.mxu0 %v1780_v8 }
 0x837   :  { %1603 = vmatprep.subr.bf16.mxu0 %v1849_v13 }
 0x83a   :  { %1605 = vmatpush1.bf16.msra.mxu0 %v1854_v18 }
 0x83b   :  { %1607 = vmatprep.subr.bf16.mxu0 %v1858_v19 }
 0x83e   :  { %1609 = vmatpush1.bf16.msra.mxu0 %v1863_v26 }
 0x83f   :  { %1611 = vmatprep.subr.bf16.mxu0 %v1869_v27 }
 0x842   :  { %1613 = vmatpush1.bf16.msra.mxu0 %v1874_v30 }
 0x8a3   :  { %v231_v52 = vpop.f32.mrb[10].mxu0 }
 0x8a4   :  { %v233_v54 = vpop.f32.mrb[11].mxu0 }
 0x8a7   :  { %v237_v57 = vpop.f32.mrb[12].mxu0 }
 0x8a8   :  { %v1968_v58 = vpop.f32.mrb[13].mxu0 }
 0x8ab   :  { %v1970_v59 = vpop.f32.mrb[14].mxu0 }
 0x8ac   :  { %v1972_v60 = vpop.f32.mrb[15].mxu0 }
 0x908   :  { %v624_v62 = vpop.f32.mrb[16].mxu0 }
 0x909   :  { %v629_v1 = vadd.f32 %v624_v62, %v225_v38  ;;  %v626_v2 = vpop.f32.mrb[17].mxu0 }
 0x90a   :  { %v636_v6 = vadd.f32 %v626_v2, %v1842_v0 }
 0x90b   :  { %v1394_v3 = vmul.f32 -1.442695, %v629_v1 }
 0x90d   :  { %1728 = vpow2.f32 %v1394_v3  ;;  %v76_v3 = vld [vmem:[%s2062_s2] sm:$0xff] }
 0x917   :  { %v1729_v4 = vpop.eup %1728 }
 0x918   :  { %v633_v5 = vadd.f32 1.0, %v1729_v4  ;;  %v80_v4 = vld [vmem:[%s2062_s2 + $0x20] sm:$0xff] }
 0x91a   :  { %1730 = vrcp.f32 %v633_v5  ;;  %v1783_v5 = vmov 0.0|0.0  }
 0x91b   :  { %1630 = vmatprep.subr.bf16.mxu0 %v1783_v5 }
 0x924   :  { %v1731_v9 = vpop.eup %1730 }
 0x925   :  { %v637_v10 = vmul.f32 %v1731_v9, %v636_v6  ;;  %v640_v15 = vsub.f32 1.0, %v1731_v9  ;;  %v646_v17 = vmul.f32 %v1731_v9, %v552_v50  ;;  %v78_v6 = vld [vmem:[%s2062_s2 + $0x10] sm:$0xff]  ;;  %v79_v9 = vld [vmem:[%s2062_s2 + $0x18] sm:$0xff] }
 0x927   :  { %v638_v11 = vadd.f32 %v637_v10, %v227_v39 }
 0x929   :  { %1732 = vtanh.f32 %v638_v11  ;;  %v82_v11 = vld [vmem:[%s2062_s2 + $0x30] sm:$0xff] }
 0x933   :  { %v1733_v14 = vpop.eup %1732 }
 0x934   :  { %642 = vrot.lane.b32.xlu0 %v1733_v14, %s1782_s4  ;;  %v83_v14 = vld [vmem:[%s2062_s2 + $0x38] sm:$0xff] }
 0x9a6   :  { %v643_v16 = vpop.permute.xlu0 %642 }
 0x9a7   :  { %v645_v20 = vmul.f32 %v643_v16, %v640_v15  ;;  %v1634_v15 = vpack.c.bf16 %v79_v9, %v78_v6  ;;  %v1640_v16 = vpack.c.bf16 %v83_v14, %v82_v11  ;;  %v1289_v14 = vsub.s32 3, %v1833_v61 }
 0x9a9   :  { %v647_v21 = vadd.f32 %v646_v17, %v645_v20 }
 0x9ab   :  { %649 = vrot.lane.b32.xlu1 %v647_v21, %s1782_s4 }
 0xa1d   :  { %v650_v22 = vpop.permute.xlu1 %649 }
 0xa1e   :  { %1395 = vmatmul.mubr.msk.f32.vlgmr.msra.gmra.mrb[6].mxu1 %vm270_vm2, %v650_v22 }
 0xa1f   :  { %1617 = vmatpush1.bf16.msra.mxu1 %v1847_v12  ;;  %907 = vmatprep.mubr.f32.mxu1 %v1780_v8 }
 0xa20   :  { %1619 = vmatprep.subr.bf16.mxu1 %v1849_v13 }
 0xa23   :  { %1621 = vmatpush1.bf16.msra.mxu1 %v1854_v18 }
 0xa24   :  { %1623 = vmatprep.subr.bf16.mxu1 %v1858_v19 }
 0xa27   :  { %1625 = vmatpush1.bf16.msra.mxu1 %v1863_v26 }
 0xa28   :  { %1627 = vmatprep.subr.bf16.mxu1 %v1869_v27 }
 0xa2b   :  { %1629 = vmatpush1.bf16.msra.mxu1 %v1874_v30 }
 0xa2c   :  { %1636 = vmatprep.subr.bf16.mxu1 %v1783_v5 }
 0xaf1   :  { %v719_v23 = vpop.f32.mrb[6].mxu1 }
 0xaf2   :  { %v724_v24 = vadd.f32 %v719_v23, %v231_v52  ;;  %v721_v25 = vpop.f32.mrb[7].mxu1 }
 0xaf3   :  { %v731_v13 = vadd.f32 %v721_v25, %v1842_v0 }
 0xaf4   :  { %v1396_v28 = vmul.f32 -1.442695, %v724_v24 }
 0xaf6   :  { %1734 = vpow2.f32 %v1396_v28 }
 0xb00   :  { %v1735_v12 = vpop.eup %1734 }
 0xb01   :  { %v728_v29 = vadd.f32 1.0, %v1735_v12  ;;  %v1679_v12 = vpack.i.bf16 %v79_v9, %v78_v6 }
 0xb03   :  { %1736 = vrcp.f32 %v728_v29 }
 0xb0d   :  { %v1737_v31 = vpop.eup %1736 }
 0xb0e   :  { %v732_v18 = vmul.f32 %v1737_v31, %v731_v13  ;;  %v735_v26 = vsub.f32 1.0, %v1737_v31  ;;  %v741_v30 = vmul.f32 %v1737_v31, %v647_v21 }
 0xb10   :  { %v733_v32 = vadd.f32 %v732_v18, %v233_v54 }
 0xb12   :  { %1738 = vtanh.f32 %v733_v32 }
 0xb1c   :  { %v1739_v19 = vpop.eup %1738 }
 0xb1d   :  { %737 = vrot.lane.b32.xlu0 %v1739_v19, %s1782_s4 }
 0xb8f   :  { %v738_v27 = vpop.permute.xlu0 %737 }
 0xb90   :  { %v740_v33 = vmul.f32 %v738_v27, %v735_v26 }
 0xb92   :  { %v742_v34 = vadd.f32 %v741_v30, %v740_v33 }
 0xb94   :  { %744 = vrot.lane.b32.xlu1 %v742_v34, %s1782_s4 }
 0xc06   :  { %v745_v35 = vpop.permute.xlu1 %744 }
 0xc07   :  { %1397 = vmatmul.mubr.msk.f32.vlgmr.msra.gmra.mrb[18].mxu0 %vm270_vm2, %v745_v35 }
 0xc08   :  { %1439 = vmatprep.mubr.msk.f32.mxu0 %vm1784_vm9, %v1780_v8 }
 0xcda   :  { %v814_v36 = vpop.f32.mrb[18].mxu0 }
 0xcdb   :  { %v819_v37 = vadd.f32 %v814_v36, %v237_v57  ;;  %v816_v38 = vpop.f32.mrb[19].mxu0 }
 0xcdc   :  { %v826_v41 = vadd.f32 %v816_v38, %v1842_v0 }
 0xcdd   :  { %v1398_v39 = vmul.f32 -1.442695, %v819_v37 }
 0xcdf   :  { %1740 = vpow2.f32 %v1398_v39  ;;  %v1011_v39 = vsub.s32 0, %v1833_v61 }
 0xce9   :  { %v1741_v40 = vpop.eup %1740 }
 0xcea   :  { %v823_v7 = vadd.f32 1.0, %v1741_v40 }
 0xcec   :  { %1742 = vrcp.f32 %v823_v7 }
 0xcf6   :  { %v1743_v42 = vpop.eup %1742 }
 0xcf7   :  { %v827_v43 = vmul.f32 %v1743_v42, %v826_v41  ;;  %v830_v46 = vsub.f32 1.0, %v1743_v42  ;;  %v836_v48 = vmul.f32 %v1743_v42, %v742_v34 }
 0xcf9   :  { %v828_v44 = vadd.f32 %v827_v43, %v1968_v58 }
 0xcfb   :  { %1744 = vtanh.f32 %v828_v44 }
 0xd05   :  { %v1745_v45 = vpop.eup %1744 }
 0xd06   :  { %832 = vrot.lane.b32.xlu0 %v1745_v45, %s1782_s4 }
 0xd78   :  { %v833_v47 = vpop.permute.xlu0 %832 }
 0xd79   :  { %v835_v49 = vmul.f32 %v833_v47, %v830_v46 }
 0xd7b   :  { %v837_v50 = vadd.f32 %v836_v48, %v835_v49  ;;  %v1091_v49 = vrot.slane %v1839_v63, %v1011_v39 }
 0xd7d   :  { %839 = vrot.lane.b32.xlu1 %v837_v50, %s1782_s4 }
 0xdef   :  { %v840_v51 = vpop.permute.xlu1 %839 }
 0xdf0   :  { %1399 = vmatmul.mubr.msk.f32.vlgmr.msra.gmra.mrb[8].mxu1 %vm270_vm2, %v840_v51 }
 0xdf1   :  { %1450 = vmatprep.mubr.msk.f32.mxu1 %vm1784_vm9, %v1780_v8 }
 0xec3   :  { %v909_v53 = vpop.f32.mrb[8].mxu1 }
 0xec4   :  { %v914_v55 = vadd.f32 %v909_v53, %v1970_v59  ;;  %v911_v56 = vpop.f32.mrb[9].mxu1  ;;  %v77_v59 = vld [vmem:[%s2062_s2 + $0x8] sm:$0xff] }
 0xec5   :  { %v921_v58 = vadd.f32 %v911_v56, %v1842_v0  ;;  %v1631_v0 = vpack.c.bf16 %v77_v59, %v76_v3  ;;  %v1674_v28 = vpack.i.bf16 %v77_v59, %v76_v3 }
 0xec6   :  { %v1400_v52 = vmul.f32 -1.442695, %v914_v55 }
 0xec7   :  { %1632 = vmatpush3.bf16.msra.mxu0 %v1631_v0 }
 0xec8   :  { %1746 = vpow2.f32 %v1400_v52  ;;  %1633 = vmatprep.subr.bf16.mxu0 %v1783_v5 }
 0xecb   :  { %1635 = vmatpush3.bf16.msra.mxu0 %v1634_v15  ;;  %v1290_v15 = vrot.slane %v1839_v63, %v1289_v14 }
 0xecc   :  { %1642 = vmatprep.subr.bf16.mxu0 %v1783_v5 }
 0xed2   :  { %v1747_v54 = vpop.eup %1746 }
 0xed3   :  { %v918_v57 = vadd.f32 1.0, %v1747_v54  ;;  %v1096_v54 = vsub.s32 1, %v1833_v61 }
 0xed5   :  { %1748 = vrcp.f32 %v918_v57 }
 0xedf   :  { %v1749_v62 = vpop.eup %1748 }
 0xee0   :  { %v922_v1 = vmul.f32 %v1749_v62, %v921_v58  ;;  %v925_v20 = vsub.f32 1.0, %v1749_v62  ;;  %v931_v22 = vmul.f32 %v1749_v62, %v837_v50  ;;  %v1097_v58 = vrot.slane %v1839_v63, %v1096_v54 }
 0xee2   :  { %v923_v2 = vadd.f32 %v922_v1, %v1972_v60  ;;  %v81_v60 = vld [vmem:[%s2062_s2 + $0x28] sm:$0xff]  ;;  %s1785_s2 = smov 32  }
 0xee3   :  { %v1637_v10 = vpack.c.bf16 %v81_v60, %v80_v4  ;;  %v1684_v29 = vpack.i.bf16 %v81_v60, %v80_v4 }
 0xee4   :  { %1750 = vtanh.f32 %v923_v2 }
 0xee5   :  { %1638 = vmatpush3.bf16.msra.mxu1 %v1637_v10 }
 0xee6   :  { %1639 = vmatprep.subr.bf16.mxu1 %v1783_v5 }
 0xee9   :  { %1641 = vmatpush3.bf16.msra.mxu1 %v1640_v16 }
 0xeea   :  { %1651 = vmatprep.subr.bf16.mxu1 %v1783_v5 }
 0xeee   :  { %v1751_v17 = vpop.eup %1750 }
 0xeef   :  { %927 = vrot.lane.b32.xlu0 %v1751_v17, %s1782_s4 }
 0xf61   :  { %v928_v21 = vpop.permute.xlu0 %927 }
 0xf62   :  { %v930_v23 = vmul.f32 %v928_v21, %v925_v20 }
 0xf64   :  { %v932_v24 = vadd.f32 %v931_v22, %v930_v23 }
 0xf66   :  { %934 = vrot.lane.b32.xlu1 %v932_v24, %s1782_s4  ;;  %v1013_v25 = vrot.slane %v932_v24, 1  ;;  %s1787_s4 = smov 48  }
 0xf68   :  { %1014 = vrot.lane.b32.xlu0 %v1013_v25, %s1785_s2 }
 0xf6a   :  { %1675 = vrot.lane.b32.xlu1 %v1674_v28, %s1786_s5 }
 0xf6c   :  { %1680 = vrot.lane.b32.xlu0 %v1679_v12, %s1786_s5 }
 0xf6e   :  { %1685 = vrot.lane.b32.xlu1 %v1684_v29, %s1786_s5 }
 0xf70   :  { %1690 = vrot.lane.b32.xlu0 %v1674_v28, %s1787_s4 }
 0xf72   :  { %1695 = vrot.lane.b32.xlu1 %v1679_v12, %s1787_s4 }
 0xf74   :  { %1700 = vrot.lane.b32.xlu0 %v1674_v28, %s1785_s2 }
 0xfd8   :  { %v935_v13 = vpop.permute.xlu1 %934 }
 0xfd9   :  { %1440 = vmatmul.mubr.msk.f32.vlgmr.msra.gmra.mrb[20].mxu0 %vm936_vm10, %v935_v13 }
 0xfda   :  { %v1015_v31 = vpop.permute.xlu0 %1014  ;;  %1465 = vmatprep.mubr.msk.f32.mxu0 %vm1784_vm9, %v1780_v8 }
 0xfdb   :  { %1451 = vmatmul.mubr.msk.f32.vlgmr.msra.gmra.mrb[10].mxu1 %vm936_vm10, %v1015_v31 }
 0xfdc   :  { %v1676_v18 = vpop.permute.xlu1 %1675  ;;  %1476 = vmatprep.mubr.msk.f32.mxu1 %vm1784_vm9, %v1780_v8 }
 0xfdd   :  { %v1678_v32 = vunpack.i.h.bf16 %v1676_v18  ;;  %v1677_v19 = vunpack.i.l.bf16 %v1676_v18 }
 0xfde   :  { %v1681_v26 = vpop.permute.xlu0 %1680 }
 0xfdf   :  { %v1643_v27 = vpack.c.bf16 %v1678_v32, %v1677_v19  ;;  %v1683_v30 = vunpack.i.h.bf16 %v1681_v26  ;;  %v1682_v33 = vunpack.i.l.bf16 %v1681_v26 }
 0xfe0   :  { %v1686_v35 = vpop.permute.xlu1 %1685 }
 0xfe1   :  { %v1646_v34 = vpack.c.bf16 %v1683_v30, %v1682_v33  ;;  %1644 = vmatpush3.bf16.msra.mxu0 %v1643_v27  ;;  %v1688_v36 = vunpack.i.h.bf16 %v1686_v35  ;;  %v1687_v37 = vunpack.i.l.bf16 %v1686_v35 }
 0xfe2   :  { %1645 = vmatprep.subr.bf16.mxu0 %v1783_v5  ;;  %v1691_v40 = vpop.permute.xlu0 %1690 }
 0xfe3   :  { %v1649_v38 = vpack.c.bf16 %v1688_v36, %v1687_v37  ;;  %v1693_v41 = vunpack.i.h.bf16 %v1691_v40  ;;  %v1692_v42 = vunpack.i.l.bf16 %v1691_v40 }
 0xfe4   :  { %v1696_v7 = vpop.permute.xlu1 %1695 }
 0xfe5   :  { %1647 = vmatpush3.bf16.msra.mxu0 %v1646_v34  ;;  %v1698_v43 = vunpack.i.h.bf16 %v1696_v7  ;;  %v1697_v44 = vunpack.i.l.bf16 %v1696_v7  ;;  %v1652_v46 = vpack.c.bf16 %v1693_v41, %v1692_v42 }
 0xfe6   :  { %1648 = vmatprep.subr.bf16.mxu0 %v1783_v5  ;;  %v1701_v57 = vpop.permute.xlu0 %1700 }
 0xfe7   :  { %v1655_v51 = vpack.c.bf16 %v1698_v43, %v1697_v44  ;;  %1653 = vmatpush3.bf16.msra.mxu1 %v1652_v46  ;;  %v1703_v62 = vunpack.i.h.bf16 %v1701_v57  ;;  %v1702_v1 = vunpack.i.l.bf16 %v1701_v57 }
 0xfe8   :  { %1654 = vmatprep.subr.bf16.mxu1 %v1783_v5 }
 0xfe9   :  { %1650 = vmatpush3.bf16.msra.mxu0 %v1649_v38  ;;  %v1658_v4 = vpack.c.bf16 %v1703_v62, %v1702_v1 }
 0xfeb   :  { %1656 = vmatpush3.bf16.msra.mxu1 %v1655_v51 }
 0xfec   :  { %1657 = vmatprep.subr.bf16.mxu1 %v1783_v5  ;;  %v1199_v5 = vsub.s32 2, %v1833_v61 }
 0xfee   :  { %v1200_v60 = vrot.slane %v1839_v63, %v1199_v5 }
0x10ac   :  { %v1005_v45 = vpop.f32.mrb[20].mxu0 }
0x10ad   :  { %v1012_v47 = vrot.slane %v1005_v45, %v1011_v39  ;;  %v1441_v48 = vpop.f32.mrb[21].mxu0 }
0x10ae   :  { %v1084_v50 = vpop.f32.mrb[10].mxu1 }
0x10af   :  { %v1085_v53 = vadd.f32 %v1084_v50, %v1012_v47  ;;  %v1452_v55 = vpop.f32.mrb[11].mxu1 }
0x10b1   :  { %v1092_v56 = vadd.f32 %v1091_v49, %v1085_v53 }
0x10b3   :  { %v1093_v52 = vmax.f32 %v1092_v56, 0.0 }
0x10b5   :  { %1466 = vmatmul.mubr.msk.f32.vlgmr.msra.gmra.mrb[22].mxu0 %vm1122_vm11, %v1093_v52 }
0x1188   :  { %v1192_v2 = vpop.f32.mrb[22].mxu0 }
0x1189   :  { %v1193_v3 = vadd.f32 %v1192_v2, %v1097_v58  ;;  %v1467_v59 = vpop.f32.mrb[23].mxu0 }
0x118b   :  { %v1196_v0 = vmax.f32 %v1193_v3, 0.0 }
0x118d   :  { %1477 = vmatmul.mubr.msk.f32.vlgmr.msra.gmra.mrb[12].mxu1 %vm936_vm10, %v1196_v0 }
0x118e   :  { %1659 = vmatpush3.bf16.msra.mxu1 %v1658_v4  ;;  %1483 = vmatprep.mubr.msk.f32.mxu1 %vm1784_vm9, %v1780_v8 }
0x1260   :  { %v1282_v6 = vpop.f32.mrb[12].mxu1 }
0x1261   :  { %v1283_v9 = vadd.f32 %v1282_v6, %v1200_v60  ;;  %v1478_v10 = vpop.f32.mrb[13].mxu1 }
0x1263   :  { %v1286_v11 = vmax.f32 %v1283_v9, 0.0 }
0x1265   :  { %1484 = vmatmul.mubr.msk.f32.vlgmr.msra.gmra.mrb[14].mxu1 %vm1297_vm12, %v1286_v11 }
0x1338   :  { %v1367_v16 = vpop.f32.mrb[14].mxu1 }
0x1339   :  { %v1368_v17 = vadd.f32 %v1367_v16, %v1290_v15  ;;  %v1485_v20 = vpop.f32.mrb[15].mxu1 }
0x133b   :  { %1372 = vst.msk [vmem:[%s2063_s3] sm:$0xf] %vm1371_vm13, %v1368_v17 }
0x133c   :  { %1377 = vsyncpa [#allocation3], 1 }

</bundles_post_ra>
